<compile_context>
chip_gen: v7x
topology: tpu7x:2x2x1
jax: 0.10.0
libtpu: 0.0.40
codegen_flags: <defaults>
</compile_context>

<pallas_src>
import copy
import functools

import jax
import jax.numpy as jnp
from jax.experimental import pallas as pl
from jax.experimental.pallas import tpu as pltpu

# Explicit scoped-VMEM budget: v5e's default is only 16 MiB; 32 MiB is safe on
# v5e/v6e (128 MiB physical) and v7x (64 MiB physical).
_VMEM_LIMIT = 32 * 1024 * 1024


# ----------------------------- Pallas kernels -----------------------------

def _fused_mlp_kernel(x_ref, w1_ref, b1_ref, w2_ref, b2_ref, o_ref, *,
                      act1, act2):
    """o = act2(act1(x @ w1 + b1) @ w2 + b2) in one kernel (hidden stays in VMEM).

    x:[tm,Din] f32, w1:[Din,Dhid] bf16, b1:[1,Dhid] f32,
    w2:[Dhid,Dout] bf16, b2:[1,Dout] f32, o:[tm,Dout] out dtype.
    """
    # In-kernel VPU cast (VALU has slack under the MXU) — avoids a separate
    # host-side cast pass that would double the activation HBM traffic.
    x = x_ref[...].astype(jnp.bfloat16)
    h = jnp.dot(x, w1_ref[...], preferred_element_type=jnp.float32)
    h = h + b1_ref[...]                      # bias + activation in f32
    if act1 == "relu":
        h = jnp.maximum(h, 0.0)
    h = h.astype(w2_ref.dtype)               # bf16 for the second MXU pass
    y = jnp.dot(h, w2_ref[...], preferred_element_type=jnp.float32)
    y = y + b2_ref[...]
    if act2 == "relu":
        y = jnp.maximum(y, 0.0)
    o_ref[...] = y.astype(o_ref.dtype)


def _linear_tiled_kernel(x_ref, w_ref, b_ref, o_ref, acc_ref, *, activation):
    """(M,N,K)-tiled linear: acc += x_tile @ w_tile; bias+act only at k==last."""
    @pl.when(pl.program_id(2) == 0)
    def _():
        acc_ref[...] = jnp.zeros_like(acc_ref)

    x = x_ref[...].astype(jnp.bfloat16)      # no-op if the input is already bf16
    acc_ref[...] += jnp.dot(x, w_ref[...], preferred_element_type=jnp.float32)

    @pl.when(pl.program_id(2) == pl.num_programs(2) - 1)
    def _():
        y = acc_ref[...] + b_ref[...]
        if activation == "relu":
            y = jnp.maximum(y, 0.0)
        o_ref[...] = y.astype(o_ref.dtype)


# ------------------------------ tile selection ------------------------------

def _divisible_tile(dim, target):
    """Largest multiple of 128 <= min(dim, target) that divides dim."""
    t = max(128, (min(dim, target) // 128) * 128)
    while dim % t != 0:
        t -= 128
    return t


def _fused_batch_tile(B):
    # Big tiles -> fewer ~0.35 µs grid steps on the single-TC v5e/v6e; cap at
    # 512 so the f32 hidden temporary (tm x D_hid) stays small.
    tm = _divisible_tile(B, 512)
    # Keep >=2 "parallel" grid steps when possible so v7x's 2 TCs both work.
    if B // tm < 2 and B >= 256:
        tm = _divisible_tile(B, B // 2)
    return tm


def _linear_tiles(M, N, K):
    tn = _divisible_tile(N, 256)   # 256 = native MXU width on v6e/v7x (2 vregs on v5e)
    tk = _divisible_tile(K, 512)   # fewer K steps -> fewer accumulator revisits
    tm = _divisible_tile(M, 512)
    if (M // tm) * (N // tn) < 2 and M >= 256:   # >=2 parallel steps for v7x's 2 TCs
        tm = _divisible_tile(M, M // 2)
    return tm, tn, tk


# ----------------------------- kernel wrappers -----------------------------

def fused_mlp(x, w1_t, b1, w2_t, b2, act1="relu", act2="none",
              out_dtype=jnp.float32):
    """Fused Linear->act->Linear.  Weights stay VMEM-resident; batch is tiled."""
    B, D_in = x.shape
    D_hid = w1_t.shape[1]
    D_out = w2_t.shape[1]
    assert B % 128 == 0 and D_in % 128 == 0 and D_hid % 128 == 0 \
        and D_out % 128 == 0, "demo requires 128-multiple dims (lane-dense tiles)"

    tm = _fused_batch_tile(B)
    grid = (B // tm,)

    out_bytes = jnp.dtype(out_dtype).itemsize
    flops = 2 * B * (D_in * D_hid + D_hid * D_out)
    bytes_accessed = (x.size * x.dtype.itemsize          # real (f32) input bytes
                      + (w1_t.size + w2_t.size) * 2
                      + (b1.size + b2.size) * 4
                      + B * D_out * out_bytes)

    # TODO(synk): at larger model widths mark the grid-invariant weight/bias
    # specs pipeline_mode=pl.Buffered(1) so default double-buffering does not
    # double resident-weight VMEM (budget: 2*(Din*Dhid+Dhid*Dout)*2 bytes must
    # fit the scoped limit); irrelevant at this ~96K-element size.
    return pl.pallas_call(
        functools.partial(_fused_mlp_kernel, act1=act1, act2=act2),
        out_shape=jax.ShapeDtypeStruct((B, D_out), out_dtype),
        grid=grid,
        in_specs=[
            pl.BlockSpec((tm, D_in), lambda i: (i, 0)),      # batch-tiled x (f32)
            pl.BlockSpec((D_in, D_hid), lambda i: (0, 0)),   # VMEM-resident w1
            pl.BlockSpec((1, D_hid), lambda i: (0, 0)),      # resident b1
            pl.BlockSpec((D_hid, D_out), lambda i: (0, 0)),  # resident w2
            pl.BlockSpec((1, D_out), lambda i: (0, 0)),      # resident b2
        ],
        out_specs=pl.BlockSpec((tm, D_out), lambda i: (i, 0)),
        compiler_params=pltpu.CompilerParams(
            dimension_semantics=("parallel",),               # shards across v7x's 2 TCs
            vmem_limit_bytes=_VMEM_LIMIT),
        cost_estimate=pl.CostEstimate(
            flops=flops, transcendentals=0, bytes_accessed=bytes_accessed),
    )(x, w1_t, b1, w2_t, b2)


def pallas_linear(x, weight_t, bias2d, activation="none", out_dtype=jnp.float32):
    """Standalone tiled Linear: y = act(x @ weight_t + bias).

    weight_t is pre-transposed (in, out) bf16; bias2d is (1, out) f32.
    Input may be f32 or bf16 (cast to bf16 in-kernel); output dtype selectable
    so chained linears can hand off bf16 without an extra HBM recast pass.
    """
    M, K = x.shape
    K2, N = weight_t.shape
    assert K == K2
    assert M % 128 == 0 and N % 128 == 0 and K % 128 == 0, \
        "demo requires 128-multiple dims (lane-dense tiles)"

    tm, tn, tk = _linear_tiles(M, N, K)
    grid = (M // tm, N // tn, K // tk)

    out_bytes = jnp.dtype(out_dtype).itemsize
    flops = 2 * M * N * K
    bytes_accessed = (x.size * x.dtype.itemsize + weight_t.size * 2
                      + bias2d.size * 4 + M * N * out_bytes)

    return pl.pallas_call(
        functools.partial(_linear_tiled_kernel, activation=activation),
        out_shape=jax.ShapeDtypeStruct((M, N), out_dtype),
        grid=grid,
        in_specs=[
            pl.BlockSpec((tm, tk), lambda i, j, k: (i, k)),
            pl.BlockSpec((tk, tn), lambda i, j, k: (k, j)),
            pl.BlockSpec((1, tn), lambda i, j, k: (0, j)),
        ],
        out_specs=pl.BlockSpec((tm, tn), lambda i, j, k: (i, j)),
        scratch_shapes=[pltpu.VMEM((tm, tn), jnp.float32)],
        compiler_params=pltpu.CompilerParams(
            dimension_semantics=("parallel", "parallel", "arbitrary"),
            vmem_limit_bytes=_VMEM_LIMIT),
        cost_estimate=pl.CostEstimate(
            flops=flops, transcendentals=0, bytes_accessed=bytes_accessed),
    )(x, weight_t, bias2d)


# --------------------------- reference (pure jnp) ---------------------------

def _linear_ref(x, weight_t, bias2d, activation, out_dtype):
    """Matches kernel numerics: bf16 inputs, f32 accumulate, f32 epilogue."""
    xb = x.astype(jnp.bfloat16).astype(jnp.float32)
    w = weight_t.astype(jnp.float32)
    y = xb @ w + bias2d
    if activation == "relu":
        y = jnp.maximum(y, 0.0)
    return y.astype(out_dtype)


def _assert_close(a, b, tol, msg):
    a = jnp.asarray(a, jnp.float32)
    b = jnp.asarray(b, jnp.float32)
    assert jnp.allclose(a, b, atol=tol, rtol=tol), msg


# ------------------------- "nn.Module"-like layers -------------------------

class PallasLinear:
    """Equivalent of torch.nn.Linear (+ optional fused ReLU epilogue)."""

    def __init__(self, key, in_features, out_features, activation="none",
                 out_dtype=jnp.float32):
        kw, kb = jax.random.split(key)
        bound = 1.0 / (in_features ** 0.5)      # PyTorch default uniform init
        w = jax.random.uniform(
            kw, (out_features, in_features), jnp.float32, -bound, bound)
        # Pre-transpose ONCE at init, store bf16 for the MXU.
        self.weight_t = w.T.astype(jnp.bfloat16)             # (in, out)
        self.bias2d = jax.random.uniform(
            kb, (1, out_features), jnp.float32, -bound, bound)
        self.activation = activation
        self.out_dtype = out_dtype

    def __call__(self, x):
        return pallas_linear(x, self.weight_t, self.bias2d,
                             self.activation, self.out_dtype)

    def reference(self, x):
        return _linear_ref(x, self.weight_t, self.bias2d,
                           self.activation, self.out_dtype)


class ScaledPallasLinear:
    """Example replacement module produced by replacement_func."""

    def __init__(self, linear: PallasLinear, scale: float = 0.5):
        self.weight_t = (linear.weight_t.astype(jnp.float32)
                         * scale).astype(jnp.bfloat16)
        self.bias2d = linear.bias2d * scale
        self.activation = linear.activation
        self.out_dtype = linear.out_dtype

    def __call__(self, x):
        return pallas_linear(x, self.weight_t, self.bias2d,
                             self.activation, self.out_dtype)

    def reference(self, x):
        return _linear_ref(x, self.weight_t, self.bias2d,
                           self.activation, self.out_dtype)


class BaseMLP:
    """Concrete base model wrapped by RepNet: Linear -> ReLU -> Linear.

    The ReLU is fused into fc1's epilogue; forward runs as ONE fused Pallas
    kernel (the hidden activation never touches HBM).  fc1's standalone output
    dtype is bf16 because its consumer is another linear.
    """

    def __init__(self, key, d_in, d_hidden, d_out):
        k1, k2 = jax.random.split(key)
        self.modules = {
            "fc1": PallasLinear(k1, d_in, d_hidden, activation="relu",
                                out_dtype=jnp.bfloat16),
            "fc2": PallasLinear(k2, d_hidden, d_out, activation="none",
                                out_dtype=jnp.float32),
        }

    def named_modules(self):
        return list(self.modules.items())

    def __call__(self, x):
        fc1 = self.modules["fc1"]
        fc2 = self.modules["fc2"]
        return fused_mlp(x, fc1.weight_t, fc1.bias2d, fc2.weight_t, fc2.bias2d,
                         act1=fc1.activation, act2=fc2.activation,
                         out_dtype=fc2.out_dtype)

    def reference(self, x):
        x = self.modules["fc1"].reference(x)
        x = self.modules["fc2"].reference(x)
        return x


# --------------------------------- RepNet ---------------------------------

class RepNet:
    """JAX port of RepNet: forward delegates to a deep-copied base model.

    Module-replacement machinery is host-side Python glue (no kernel
    equivalent exists or is needed); the compute hot path stays inside the
    Pallas kernels of the (possibly replaced) layers.
    """

    def __init__(self, model, condition_func, replacement_func):
        self._base_model = copy.deepcopy(model)
        self.condition_func = condition_func
        self.replacement_func = replacement_func
        self.replacements = {}
        assert hasattr(self, "_base_model"), "_base_model has not been set in RepNet."

    def __getattr__(self, name):
        # Delegate unknown attributes to the base model (mirrors nn.Module path).
        base = object.__getattribute__(self, "_base_model")
        return getattr(base, name)

    def replace_base_model_layers(self):
        return self._replace_base_model_layers(self.condition_func,
                                               self.replacement_func)

    def _replace_base_model_layers(self, condition_func, replacement_func):
        for name, layer in self._base_model.named_modules():
            if condition_func(layer, name):
                replacement_module = replacement_func(layer)
                addr = self._parse_model_addr(name)
                self.replacements[name] = replacement_module
                self._set_module(self._base_model, addr, replacement_module)
        return self

    @staticmethod
    def _parse_model_addr(access_str):
        parsed = access_str.split(".")
        out = []
        for p in parsed:
            try:
                out.append(int(p))
            except ValueError:
                out.append(p)
        return out

    @staticmethod
    def _set_module(model, replacement_addr_list, replacement_layer):
        # TODO(synk): only flat (single-level) module dicts are supported here;
        # deep nested addressing from the PyTorch version is structural glue.
        target = replacement_addr_list[-1]
        model.modules[target] = replacement_layer

    def replacement_report(self):
        print("Replacement report:")
        for addr, rep in self.replacements.items():
            print(f"{addr:<30} {type(rep).__name__:<30}")

    def forward(self, *args, **kwargs):
        return self._base_model(*args, **kwargs)

    __call__ = forward


# ---------------------------------- main -----------------------------------

if __name__ == "__main__":
    key = jax.random.PRNGKey(0)
    k_model, k_x = jax.random.split(key)

    # Lane-dense shapes: every feature dim a multiple of 128, batch a multiple
    # of the batch tile (still tiny: ~96K weight elements total).
    B, D_IN, D_HID, D_OUT = 256, 128, 256, 128
    base = BaseMLP(k_model, D_IN, D_HID, D_OUT)
    x = jax.random.normal(k_x, (B, D_IN), dtype=jnp.float32)

    # Sanity-check the standalone (M,N,K)-tiled linear kernel (exercises the
    # K-tiled accumulator + pl.when finalize path, bf16->bf16 hand-off).
    fc1, fc2 = base.modules["fc1"], base.modules["fc2"]
    h = fc1(x)                                   # bf16 output (consumer is fc2)
    jax.block_until_ready(h)
    _assert_close(h, fc1.reference(x), 2e-2, "standalone fc1 mismatch")
    y_seq = fc2(h)                               # consumes bf16 directly
    jax.block_until_ready(y_seq)
    _assert_close(y_seq, fc2.reference(h), 1e-2, "standalone fc2 mismatch")

    # RepNet wrapping: replace "fc2" with a scaled linear.
    cond = lambda module, name: isinstance(module, PallasLinear) and name == "fc2"
    repl = lambda module: ScaledPallasLinear(module, scale=0.5)
    repnet = RepNet(base, cond, repl)

    # Forward before replacement (fused single-kernel MLP).
    y0 = repnet(x)
    jax.block_until_ready(y0)
    _assert_close(y0, repnet._base_model.reference(x), 1e-2,
                  "pre-replacement mismatch")

    # Apply layer replacement, forward again (fusion still holds).
    repnet.replace_base_model_layers()
    y1 = repnet(x)
    jax.block_until_ready(y1)
    _assert_close(y1, repnet._base_model.reference(x), 1e-2,
                  "post-replacement mismatch")
    assert "fc2" in repnet.replacements

    print("KERNEL_OK")
</pallas_src>

<mosaic_0001>
module attributes {stable_mosaic.version = 11 : i64} {
  func.func @_linear_tiled_kernel(%arg0: i32, %arg1: i32, %arg2: i32, %arg3: memref<128x128xf32, #tpu.memory_space<vmem>>, %arg4: memref<128x256xbf16, #tpu.memory_space<vmem>>, %arg5: memref<1x256xf32, #tpu.memory_space<vmem>>, %arg6: memref<128x256xbf16, #tpu.memory_space<vmem>>, %arg7: memref<128x256xf32, #tpu.memory_space<vmem>>) attributes {dimension_semantics = [#tpu.dimension_semantics<parallel>, #tpu.dimension_semantics<parallel>, #tpu.dimension_semantics<arbitrary>], iteration_bounds = array<i64: 2, 1, 1>, scalar_prefetch = 0 : i64, scratch_operands = 1 : i64, tpu.core_type = #tpu.core_type<tc>, window_params = [{transform_indices = @transform_0, window_bounds = array<i64: 128, 128>}, {transform_indices = @transform_1, window_bounds = array<i64: 128, 256>}, {transform_indices = @transform_2, window_bounds = array<i64: 1, 256>}, {transform_indices = @transform_3, window_bounds = array<i64: 128, 256>}]} {
    %c0_i32 = arith.constant 0 : i32
    %0 = arith.cmpi eq, %arg2, %c0_i32 : i32
    %1 = arith.extui %0 : i1 to i32
    %c0_i32_0 = arith.constant 0 : i32
    %2 = arith.cmpi ne, %1, %c0_i32_0 : i32
    scf.if %2 {
      %cst_10 = arith.constant 0.000000e+00 : f32
      %13 = vector.broadcast %cst_10 : f32 to vector<128x256xf32>
      %c0_11 = arith.constant 0 : index
      %c0_12 = arith.constant 0 : index
      %14 = vector.load %arg7[%c0_11, %c0_12] : memref<128x256xf32, #tpu.memory_space<vmem>>, vector<128x256xf32>
      tpu.vector_store %arg7[%c0_11, %c0_12], %13 {strides = array<i32>} : memref<128x256xf32, #tpu.memory_space<vmem>>, vector<128x256xf32>,
    } else {
    }
    %c0 = arith.constant 0 : index
    %c0_1 = arith.constant 0 : index
    %3 = vector.load %arg3[%c0, %c0_1] : memref<128x128xf32, #tpu.memory_space<vmem>>, vector<128x128xf32>
    %4 = arith.truncf %3 : vector<128x128xf32> to vector<128x128xbf16>
    %c0_2 = arith.constant 0 : index
    %c0_3 = arith.constant 0 : index
    %5 = vector.load %arg7[%c0_2, %c0_3] : memref<128x256xf32, #tpu.memory_space<vmem>>, vector<128x256xf32>
    %c0_4 = arith.constant 0 : index
    %c0_5 = arith.constant 0 : index
    %6 = vector.load %arg4[%c0_4, %c0_5] : memref<128x256xbf16, #tpu.memory_space<vmem>>, vector<128x256xbf16>
    %cst = arith.constant dense<0.000000e+00> : vector<128x256xf32>
    %7 = tpu.matmul %4, %6, %cst {dimension_numbers = #tpu.dot_dimension_numbers<[1], [0], [0], [1], [0, 0, 1, 1], [], []>} : vector<128x128xbf16>, vector<128x256xbf16>, vector<128x256xf32> -> vector<128x256xf32>
    %8 = arith.addf %5, %7 : vector<128x256xf32>
    %c0_6 = arith.constant 0 : index
    %c0_7 = arith.constant 0 : index
    %9 = vector.load %arg7[%c0_6, %c0_7] : memref<128x256xf32, #tpu.memory_space<vmem>>, vector<128x256xf32>
    tpu.vector_store %arg7[%c0_6, %c0_7], %8 {strides = array<i32>} : memref<128x256xf32, #tpu.memory_space<vmem>>, vector<128x256xf32>,
    %c0_i32_8 = arith.constant 0 : i32
    %10 = arith.cmpi eq, %arg2, %c0_i32_8 : i32
    %11 = arith.extui %10 : i1 to i32
    %c0_i32_9 = arith.constant 0 : i32
    %12 = arith.cmpi ne, %11, %c0_i32_9 : i32
    scf.if %12 {
      %c0_10 = arith.constant 0 : index
      %c0_11 = arith.constant 0 : index
      %13 = vector.load %arg7[%c0_10, %c0_11] : memref<128x256xf32, #tpu.memory_space<vmem>>, vector<128x256xf32>
      %c0_12 = arith.constant 0 : index
      %c0_13 = arith.constant 0 : index
      %14 = vector.load %arg5[%c0_12, %c0_13] : memref<1x256xf32, #tpu.memory_space<vmem>>, vector<1x256xf32>
      %15 = vector.broadcast %14 : vector<1x256xf32> to vector<128x256xf32>
      %16 = arith.addf %13, %15 : vector<128x256xf32>
      %cst_14 = arith.constant 0.000000e+00 : f32
      %17 = vector.broadcast %cst_14 : f32 to vector<128x256xf32>
      %18 = arith.maximumf %16, %17 : vector<128x256xf32>
      %19 = arith.truncf %18 : vector<128x256xf32> to vector<128x256xbf16>
      %c0_15 = arith.constant 0 : index
      %c0_16 = arith.constant 0 : index
      %20 = vector.load %arg6[%c0_15, %c0_16] : memref<128x256xbf16, #tpu.memory_space<vmem>>, vector<128x256xbf16>
      tpu.vector_store %arg6[%c0_15, %c0_16], %19 {strides = array<i32>} : memref<128x256xbf16, #tpu.memory_space<vmem>>, vector<128x256xbf16>,
    } else {
    }
    return
  }
  func.func @transform_0(%arg0: i32, %arg1: i32, %arg2: i32) -> (i32, i32) {
    %c0_i32 = arith.constant 0 : i32
    return %arg0, %arg2 : i32, i32
  }
  func.func @transform_1(%arg0: i32, %arg1: i32, %arg2: i32) -> (i32, i32) {
    %c0_i32 = arith.constant 0 : i32
    return %arg2, %arg1 : i32, i32
  }
  func.func @transform_2(%arg0: i32, %arg1: i32, %arg2: i32) -> (i32, i32) {
    %c0_i32 = arith.constant 0 : i32
    %c0_i32_0 = arith.constant 0 : i32
    return %c0_i32, %arg1 : i32, i32
  }
  func.func @transform_3(%arg0: i32, %arg1: i32, %arg2: i32) -> (i32, i32) {
    %c0_i32 = arith.constant 0 : i32
    return %arg0, %arg1 : i32, i32
  }
}

</mosaic_0001>

<bundles_post_ra>
// kernel: tpu_custom_call.1
= control target key start
LH: loop header
LB: loop body
LE: loop exit
PB: predicated region body
PF: predicated region fallthrough
CT: control target
= control target key end

     0   :  { %8 = vsyncpa [#allocation4], 0  ;;  %s1662_s0 = inlined_call_operand.hbm [shape: f32[256,128], index: 0, kind: input, shape index: {}]   ;;  %s1663_s1 = inlined_call_operand.hbm [shape: bf16[128,256], index: 1, kind: input, shape index: {}]   ;;  %s1664_s2 = inlined_call_operand.vmem [shape: f32[1,256], index: 2, kind: input, shape index: {}]   ;;  %s1665_s3 = inlined_call_operand.hbm [shape: bf16[256,256], index: 3, kind: output, shape index: {}]  }
   0x1   :  { %10 = vsyncpa [#allocation4 + $0x1], 0 }
   0x2   :  { %11 = vsyncpa [#allocation7], 0 }
   0x3   :  { %12 = vsyncpa [#allocation5], 0 }
   0x4   :  { %14 = vsyncpa [#allocation5 + $0x1], 0  ;;  %s1349_s12 = smov 0   ;;  %s1351_s13 = smov 0  }
   0x5   :  { %s1353_s14 = smov 0   ;;  %s1355_s15 = smov 0  }
   0x6   :  { %s1357_s16 = smov 0   ;;  %s1359_s17 = smov 0  }
   0x7 LB: > { %s987_s18 = sadd.s32 4294967295, %s1319_s17   ;;  %s988_s19 = sadd.s32 4294967294, %s1319_s17   ;;  %s1319_s17 = sphi %s1359_s17, %s20_s17   ;;  %s1315_s16 = sphi %s1357_s16, %s1689_s16   ;;  %s1311_s15 = sphi %s1355_s15, %s1688_s15   ;;  %s1307_s14 = sphi %s1353_s14, %s1687_s14   ;;  %s1303_s13 = sphi %s1351_s13, %s1686_s13   ;;  %s1299_s12 = sphi %s1349_s12, %s1685_s12  }
   0x8   : > { %p61_p0 = scmp.ne.s32.totalorder %s1303_s13, %s1299_s12  ;;  %p1383_p1 = scmp.eq.s32.totalorder %s987_s18, 0 }
   0x9   : > { %p1387_p2 = scmp.eq.s32.totalorder %s987_s18, 1  ;;  %p147_p3 = scmp.eq.s32.totalorder %s988_s19, 1 }
   0xa   : > { %s1670_s20 = scalar_select %p1383_p1, 1, 0 }
   0xb   : > { %s1671_s21 = scalar_select %p1387_p2, 1, 0 }
   0xc   : > { %p1393_p4 = por %p1383_p1, %p61_p0  ;;  %p989_p5 = scmp.ge.s32.totalorder %s1319_s17, 1 }
   0xd   : > { %p1398_p6 = por %p147_p3, %p61_p0  ;;  %p154_p7 = scmp.lt.s32.totalorder %s1319_s17, 3 }
   0xe   : > { %s1672_s22 = scalar_select %p1393_p4, 1, 0 }
   0xf   : > { %s1673_s23 = scalar_select %p1398_p6, 1, 0 }
  0x10   : > { %p1403_p8 = pnand %p989_p5, %p154_p7  ;;  %s1321_s25 = smov [#allocation6]  }
  0x11   : > { %s172_s26 = sshll.u32 %s1321_s25, 4  ;;  %s39_s28 = sadd.s32 1, %s1315_s16  ;;  %s173_s26 = int_to_ptr.vmem [resolvable:$true] %s172_s26 }
  0x12   : > { %s1674_s24 = scalar_select %p1403_p8, 1, 0 }
  0x13   : > { %p1081_p9 = pneg %p1403_p8  ;;  %s1175_s4 = scalar_lea.hbm %s1663_s1, 2048 }
  0x14   : > { %p1176_p12 = scmp.ne.s32.totalorder %s1663_s1, %s1175_s4  ;;  %p1182_p5 = scmp.lt.u32.totalorder %s1175_s4, %s1663_s1 }
  0x15   : > { %p1412_p11 = pnand %p1081_p9, %p1383_p1 }
  0x17   : > { %p1177_p13 = pneg %p1412_p11 }
  0x19   : > { %p1178_p0 = pnand %p1177_p13, %p1176_p12 }
  0x1b   : > { %p1179_p3 = pneg %p1178_p0 }
  0x1d   : > { %p1184_p7 = pnand %p1182_p5, %p1179_p3 }
  0x1f   : > { %1187 = shalt.err (!%p1184_p7)
}
  0x20   : > { %s1188_s9 = scalar_lea.vmem %s173_s26, 2048  ;;  %p1196_p1 = scmp.lt.s32.totalorder %s173_s26, %s173_s26 }
  0x21   : > { %p1189_p9 = scmp.ne.s32.totalorder %s173_s26, %s1188_s9  ;;  %p1197_p4 = scmp.lt.s32.totalorder %s1188_s9, %s1188_s9 }
  0x23   : > { %p1191_p10 = pnand %p1189_p9, %p1177_p13  ;;  %p1198_p8 = por %p1197_p4, %p1196_p1 }
  0x25   : > { %p1192_p6 = pneg %p1191_p10 }
  0x27   : > { %p1199_p2 = pnand %p1198_p8, %p1192_p6 }
  0x29   : > { %1202 = shalt.err (!%p1199_p2)
}
  0x2a   : > { %s1322_s10 = smov 128   ;;  %s1323_s11 = smov 8  }
  0x2b   : > { %1084 = dma.hbm_to_vmem [thread:$0]  (!%p1412_p11), %s1663_s1, 2048, %s173_s26, [#allocation7], %s1322_s10, %s1322_s10, %s1323_s11  }
  0x2c   : > { %p41_p1 = scmp.ge.s32.totalorder %s39_s28, 2  ;;  %s48_s25 = sadd.s32 1, %s1307_s14 }
  0x2d   : > { %p55_p2 = scmp.ne.s32.totalorder %s1307_s14, %s1303_s13  ;;  %p56_p4 = scmp.eq.s32.totalorder %s1319_s17, 0 }
  0x2e   : > { %s1691_s28 = smov (%p41_p1, %s39_s28), 0  ;;  %p1677_p8 = scmp.ne.s32.totalorder %s1671_s21, 0 }
  0x2f   : > { %p1442_p6 = por %p56_p4, %p55_p2  ;;  %s43_s30 = ssub.s32 %s1315_s16, %s1691_s28 }
  0x30   : > { %p1448_p10 = por %p1677_p8, %p55_p2  ;;  %p1094_p12 = scmp.lt.s32.totalorder %s1319_s17, 2 }
  0x31   : > { %p46_p11 = scmp.eq.s32.totalorder %s43_s30, 0  ;;  %s194_s26 = sand.u32 1, %s1307_s14  }
  0x32   : > { %s993_s4 = sshll.u32 %s194_s26, 7  ;;  %s1038_s6 = sshll.u32 %s1315_s16, 11 }
  0x33   : > { %s1457_s5 = scalar_select %p46_p11, %s1307_s14, %s48_s25  }
  0x34   : > { %s1463_s9 = scalar_lea.hbm %s1662_s0, %s1038_s6  ;;  %s198_s21 = scalar_lea.vmem [#allocation3], %s993_s4 }
  0x35   : > { %s206_s18 = sshll.u32 %s198_s21, 4  ;;  %p1469_p13 = pnand %p1094_p12, %p1442_p6  ;;  %s1465_s18 = int_to_ptr.vmem [resolvable:$true] %s206_s18 }
  0x36   : > { %s1473_s25 = scalar_lea.sflag [#allocation4], %s194_s26  ;;  %s1203_s30 = scalar_lea.hbm %s1463_s9, 2048 }
  0x37   : > { %p1204_p0 = scmp.ne.s32.totalorder %s1463_s9, %s1203_s30  ;;  %p1205_p3 = pneg %p1469_p13 }
  0x38   : > { %s1208_s29 = scalar_lea.hbm %s1662_s0, 4096  ;;  %p1209_p9 = scmp.lt.u32.totalorder %s1463_s9, %s1662_s0 }
  0x39   : > { %p1206_p5 = pnand %p1205_p3, %p1204_p0  ;;  %p1210_p1 = scmp.lt.u32.totalorder %s1208_s29, %s1203_s30 }
  0x3a   : > { %p1212_p4 = scmp.lt.u32.totalorder %s1203_s30, %s1463_s9 }
  0x3b   : > { %p1207_p7 = pneg %p1206_p5  ;;  %p1211_p2 = por %p1210_p1, %p1209_p9 }
  0x3d   : > { %p1213_p6 = por %p1212_p4, %p1211_p2 }
  0x3f   : > { %p1214_p8 = pnand %p1213_p6, %p1207_p7 }
  0x41   : > { %1217 = shalt.err (!%p1214_p8)
}
  0x42   : > { %s1218_s26 = scalar_lea.vmem %s1465_s18, 2048  ;;  %s1324_s21 = smov [#allocation3]  }
  0x43   : > { %p1219_p12 = scmp.ne.s32.totalorder %s1465_s18, %s1218_s26  ;;  %s1223_s4 = sshll.u32 %s1324_s21, 4  ;;  %s1224_s4 = int_to_ptr.vmem [resolvable:$false] %s1223_s4 }
  0x44   : > { %s1225_s6 = scalar_lea.vmem %s1224_s4, 4096  ;;  %p1226_p5 = scmp.lt.s32.totalorder %s1465_s18, %s1224_s4 }
  0x45   : > { %p1221_p11 = pnand %p1219_p12, %p1205_p3  ;;  %p1227_p9 = scmp.lt.s32.totalorder %s1225_s6, %s1218_s26 }
  0x47   : > { %p1222_p0 = pneg %p1221_p11  ;;  %p1228_p1 = por %p1227_p9, %p1226_p5 }
  0x49   : > { %p1229_p2 = pnand %p1228_p1, %p1222_p0 }
  0x4b   : > { %1232 = shalt.err (!%p1229_p2)
}
  0x4c   : > { %1088 = dma.hbm_to_vmem [thread:$0]  (!%p1469_p13), %s1463_s9, 2048, %s1465_s18, %s1473_s25, %s1322_s10, %s1322_s10, %s1323_s11  }
  0x4d   : > { %p1680_p3 = scmp.ne.s32.totalorder %s1674_s24, 0 }
  0x4e   : > { %s1507_s30 = sand.u32 (!%p1680_p3), 1, %s1303_s13   ;;  %p1681_p7 = scmp.ne.s32.totalorder (!%p1680_p3), %s1672_s22, 0 }
  0x4f   : > { %218 = sbr.rel (%p1680_p3) target bundleno = 384 (0x180), region = 32  ;;  %s997_s29 = sshll.u32 (!%p1680_p3), %s1507_s30, 7 }
  0x50   : > { %s221_s7 = scalar_lea.sflag (!%p1680_p3), [#allocation4], %s1507_s30  ;;  %s1513_s19 = scalar_lea.vmem (!%p1680_p3), [#allocation3], %s997_s29 }
  0x56   : > { %1286 = dma.done.wait (%p1681_p7), %s221_s7, 2048  }
  0x57   : > { %1288 = vsyncadd (%p1681_p7), %s221_s7, 4294965248  ;;  %p1682_p13 = scmp.ne.s32.totalorder %s1670_s20, 0 }
  0x59   : > { %1290 = dma.done.wait (%p1682_p13), [#allocation7], 2048  }
  0x5a   : > { %1292 = vsyncadd (%p1682_p13), [#allocation7], 4294965248  ;;  %v1325_v0 = vmov 0   ;;  %v1151_v1 = vld [vmem:[#allocation6 + $0x4] ss:$8 sps:$4 sm:$0xff]   ;;  %v304_v23 = vld [vmem:[%s1513_s19 + $0x10] sm:$0xff]  ;;  %v668_v41 = vlaneseq }
  0x5b   : > { %486 = vmatprep.mubr.bf16.mxu0 %v1325_v0  ;;  %526 = vmatprep.mubr.bf16.mxu1 %v1325_v0  ;;  %v1153_v2 = vld [vmem:[#allocation6] ss:$8 sps:$4 sm:$0xff]   ;;  %v1154_v3 = vld [vmem:[#allocation6 + $0x14] ss:$8 sps:$4 sm:$0xff]   ;;  %v1156_v4 = vld [vmem:[#allocation6 + $0x10] ss:$8 sps:$4 sm:$0xff]  }
  0x5c   : > { %454 = vmatprep.subr.bf16.mxu0 %v1151_v1  ;;  %1057 = vmatprep.subr.bf16.mxu1 %v1151_v1  ;;  %v1157_v5 = vld [vmem:[#allocation6 + $0x24] ss:$8 sps:$4 sm:$0xff]   ;;  %v1159_v6 = vld [vmem:[#allocation6 + $0x20] ss:$8 sps:$4 sm:$0xff]   ;;  %v1160_v7 = vld [vmem:[#allocation6 + $0x34] ss:$8 sps:$4 sm:$0xff]  }
  0x5d   : > { %455 = vmatpush1.bf16.msra.mxu0 %v1153_v2  ;;  %1065 = vmatpush1.bf16.msra.mxu1 %v1153_v2  ;;  %v1162_v8 = vld [vmem:[#allocation6 + $0x30] ss:$8 sps:$4 sm:$0xff]   ;;  %v1163_v9 = vld [vmem:[#allocation6 + $0x44] ss:$8 sps:$4 sm:$0xff]   ;;  %v1165_v10 = vld [vmem:[#allocation6 + $0x40] ss:$8 sps:$4 sm:$0xff]  }
  0x5e   : > { %456 = vmatprep.subr.bf16.mxu0 %v1154_v3  ;;  %1058 = vmatprep.subr.bf16.mxu1 %v1154_v3  ;;  %v1166_v11 = vld [vmem:[#allocation6 + $0x54] ss:$8 sps:$4 sm:$0xff]   ;;  %v1168_v12 = vld [vmem:[#allocation6 + $0x50] ss:$8 sps:$4 sm:$0xff]   ;;  %v1169_v13 = vld [vmem:[#allocation6 + $0x64] ss:$8 sps:$4 sm:$0xff]  }
  0x5f   : > { %v1171_v14 = vld [vmem:[#allocation6 + $0x60] ss:$8 sps:$4 sm:$0xff]   ;;  %v1172_v15 = vld [vmem:[#allocation6 + $0x74] ss:$8 sps:$4 sm:$0xff]   ;;  %v1174_v16 = vld [vmem:[#allocation6 + $0x70] ss:$8 sps:$4 sm:$0xff]  }
  0x60   : > { %v302_v17 = vld [vmem:[%s1513_s19] sm:$0xff]  ;;  %v303_v18 = vld [vmem:[%s1513_s19 + $0x8] sm:$0xff]  ;;  %v305_v24 = vld [vmem:[%s1513_s19 + $0x18] sm:$0xff]  ;;  %v669_v42 = vshrl.u32 %v668_v41, 7  ;;  %s1564_s24 = scalar_lea.vmem [#allocation8], %s997_s29  ;;  %s1056_s10 = sshll.u32 %s1311_s15, 11 }
  0x61   : > { %457 = vmatpush1.bf16.msra.mxu0 %v1156_v4  ;;  %1066 = vmatpush1.bf16.msra.mxu1 %v1156_v4  ;;  %v310_v19 = vld [vmem:[%s1513_s19 + $0x40] sm:$0xff]  ;;  %v311_v20 = vld [vmem:[%s1513_s19 + $0x48] sm:$0xff]  ;;  %v318_v21 = vpack.c.bf16 %v303_v18, %v302_v17  ;;  %v312_v25 = vld [vmem:[%s1513_s19 + $0x50] sm:$0xff]  ;;  %v319_v27 = vpack.c.bf16 %v305_v24, %v304_v23  ;;  %s871_s11 = sshll.u32 %s1564_s24, 4  ;;  %s1607_s25 = scalar_lea.hbm %s1665_s3, %s1056_s10  ;;  %s1609_s11 = int_to_ptr.vmem [resolvable:$true] %s871_s11 }
  0x62   : > { %458 = vmatprep.subr.bf16.mxu0 %v1157_v5  ;;  %1059 = vmatprep.subr.bf16.mxu1 %v1157_v5  ;;  %v322_v22 = vpack.c.bf16 %v311_v20, %v310_v19  ;;  %v313_v26 = vld [vmem:[%s1513_s19 + $0x58] sm:$0xff]  ;;  %v306_v29 = vld [vmem:[%s1513_s19 + $0x20] sm:$0xff]  ;;  %v307_v30 = vld [vmem:[%s1513_s19 + $0x28] sm:$0xff]  ;;  %v670_v43 = vsub.s32 0, %v669_v42  ;;  %v674_v45 = vsub.s32 1, %v669_v42  ;;  %s855_s15 = scalar_lea.sflag [#allocation5], %s1507_s30 }
  0x63   : > { %v323_v28 = vpack.c.bf16 %v313_v26, %v312_v25  ;;  %v314_v31 = vld [vmem:[%s1513_s19 + $0x60] sm:$0xff]  ;;  %v315_v32 = vld [vmem:[%s1513_s19 + $0x68] sm:$0xff]  ;;  %v320_v33 = vpack.c.bf16 %v307_v30, %v306_v29  ;;  %v308_v35 = vld [vmem:[%s1513_s19 + $0x30] sm:$0xff]  ;;  %s1233_s8 = scalar_lea.vmem %s1609_s11, 2048  ;;  %s1326_s26 = smov [#allocation8]  }
  0x64   : > { %v324_v34 = vpack.c.bf16 %v315_v32, %v314_v31  ;;  %v309_v36 = vld [vmem:[%s1513_s19 + $0x38] sm:$0xff]  ;;  %v316_v37 = vld [vmem:[%s1513_s19 + $0x70] sm:$0xff]  ;;  %v666_v44 = vld [vmem:[%s1664_s2] sm:$0x3]  ;;  %p1234_p4 = scmp.ne.s32.totalorder %s1609_s11, %s1233_s8  ;;  %s1237_s21 = sshll.u32 %s1326_s26, 4  ;;  %s1238_s21 = int_to_ptr.vmem [resolvable:$false] %s1237_s21 }
  0x65   : > { %459 = vmatpush1.bf16.msra.mxu0 %v1159_v6  ;;  %1067 = vmatpush1.bf16.msra.mxu1 %v1159_v6  ;;  %v317_v38 = vld [vmem:[%s1513_s19 + $0x78] sm:$0xff]  ;;  %v321_v39 = vpack.c.bf16 %v309_v36, %v308_v35  ;;  %v1550_v46 = vrot.slane %v666_v44, %v670_v43  ;;  %v1552_v47 = vrot.slane %v666_v44, %v674_v45  ;;  %s1239_s4 = scalar_lea.vmem %s1238_s21, 4096  ;;  %p1240_p12 = scmp.lt.s32.totalorder %s1609_s11, %s1238_s21 }
  0x66   : > { %460 = vmatprep.subr.bf16.mxu0 %v1160_v7  ;;  %1060 = vmatprep.subr.bf16.mxu1 %v1160_v7  ;;  %v325_v40 = vpack.c.bf16 %v317_v38, %v316_v37  ;;  %p1235_p6 = pnand %p1234_p4, %p1448_p10  ;;  %p1241_p11 = scmp.lt.s32.totalorder %s1239_s4, %s1233_s8 }
  0x68   : > { %p1236_p8 = pneg %p1235_p6  ;;  %p1242_p0 = por %p1241_p11, %p1240_p12 }
  0x69   : > { %461 = vmatpush1.bf16.msra.mxu0 %v1162_v8  ;;  %1068 = vmatpush1.bf16.msra.mxu1 %v1162_v8 }
  0x6a   : > { %462 = vmatprep.subr.bf16.mxu0 %v1163_v9  ;;  %1061 = vmatprep.subr.bf16.mxu1 %v1163_v9  ;;  %p1243_p5 = pnand %p1242_p0, %p1236_p8 }
  0x6d   : > { %463 = vmatpush1.bf16.msra.mxu0 %v1165_v10  ;;  %1069 = vmatpush1.bf16.msra.mxu1 %v1165_v10 }
  0x6e   : > { %464 = vmatprep.subr.bf16.mxu0 %v1166_v11  ;;  %1062 = vmatprep.subr.bf16.mxu1 %v1166_v11 }
  0x71   : > { %465 = vmatpush1.bf16.msra.mxu0 %v1168_v12  ;;  %1070 = vmatpush1.bf16.msra.mxu1 %v1168_v12 }
  0x72   : > { %466 = vmatprep.subr.bf16.mxu0 %v1169_v13  ;;  %1063 = vmatprep.subr.bf16.mxu1 %v1169_v13 }
  0x75   : > { %467 = vmatpush1.bf16.msra.mxu0 %v1171_v14  ;;  %1071 = vmatpush1.bf16.msra.mxu1 %v1171_v14 }
  0x76   : > { %468 = vmatprep.subr.bf16.mxu0 %v1172_v15  ;;  %1064 = vmatprep.subr.bf16.mxu1 %v1172_v15 }
  0x79   : > { %469 = vmatpush1.bf16.msra.mxu0 %v1174_v16  ;;  %1072 = vmatpush1.bf16.msra.mxu1 %v1174_v16 }
  0x7c   : > { %487 = vmatmul.mubr.bf16.vlgmr.msra.gmra.mrb[0].mxu0 %v318_v21  ;;  %527 = vmatmul.mubr.bf16.vlgmr.msra.gmra.mrb[0].mxu1 %v322_v22 }
  0x7d   : > { %496 = vmatprep.mubr.bf16.mxu0 %v1325_v0  ;;  %536 = vmatprep.mubr.bf16.mxu1 %v1325_v0 }
  0x84   : > { %497 = vmatmul.mubr.bf16.gmra.mrb[4].mxu0 %v319_v27  ;;  %537 = vmatmul.mubr.bf16.gmra.mrb[4].mxu1 %v323_v28 }
  0x85   : > { %506 = vmatprep.mubr.bf16.mxu0 %v1325_v0  ;;  %546 = vmatprep.mubr.bf16.mxu1 %v1325_v0 }
  0x8c   : > { %507 = vmatmul.mubr.bf16.gmra.mrb[8].mxu0 %v320_v33  ;;  %547 = vmatmul.mubr.bf16.gmra.mrb[8].mxu1 %v324_v34 }
  0x8d   : > { %516 = vmatprep.mubr.bf16.mxu0 %v1325_v0  ;;  %556 = vmatprep.mubr.bf16.mxu1 %v1325_v0 }
  0x94   : > { %517 = vmatmul.mubr.bf16.gmra.mrb[12].mxu0 %v321_v39  ;;  %557 = vmatmul.mubr.bf16.gmra.mrb[12].mxu1 %v325_v40 }
 0x14f   : > { %v488_v48 = vpop.f32.mrb[0].mxu0  ;;  %v528_v49 = vpop.f32.mrb[0].mxu1 }
 0x150   : > { %v678_v50 = vadd.f32 %v1550_v46, %v488_v48  ;;  %v694_v51 = vadd.f32 %v1550_v46, %v528_v49  ;;  %v490_v52 = vpop.f32.mrb[1].mxu0  ;;  %v530_v53 = vpop.f32.mrb[1].mxu1 }
 0x151   : > { %v679_v54 = vadd.f32 %v1552_v47, %v490_v52  ;;  %v695_v55 = vadd.f32 %v1552_v47, %v530_v53  ;;  %v492_v56 = vpop.f32.mrb[2].mxu0  ;;  %v532_v57 = vpop.f32.mrb[2].mxu1 }
 0x152   : > { %v710_v58 = vmax.f32 %v678_v50, 0.0  ;;  %v726_v59 = vmax.f32 %v694_v51, 0.0  ;;  %v680_v60 = vadd.f32 %v1550_v46, %v492_v56  ;;  %v696_v61 = vadd.f32 %v1550_v46, %v532_v57  ;;  %v494_v62 = vpop.f32.mrb[3].mxu0  ;;  %v534_v63 = vpop.f32.mrb[3].mxu1 }
 0x153   : > { %v711_v0 = vmax.f32 %v679_v54, 0.0  ;;  %v727_v1 = vmax.f32 %v695_v55, 0.0  ;;  %v681_v2 = vadd.f32 %v1552_v47, %v494_v62  ;;  %v697_v3 = vadd.f32 %v1552_v47, %v534_v63 }
 0x154   : > { %v712_v4 = vmax.f32 %v680_v60, 0.0  ;;  %v728_v5 = vmax.f32 %v696_v61, 0.0 }
 0x155   : > { %v1039_v6 = vpack.c.bf16 %v711_v0, %v710_v58  ;;  %v1047_v7 = vpack.c.bf16 %v727_v1, %v726_v59  ;;  %v713_v8 = vmax.f32 %v681_v2, 0.0  ;;  %v729_v9 = vmax.f32 %v697_v3, 0.0 }
 0x157   : > { %838 = vst [vmem:[%s1564_s24] sm:$0xff] %v1039_v6  ;;  %846 = vst [vmem:[%s1564_s24 + $0x40] sm:$0xff] %v1047_v7  ;;  %v1040_v10 = vpack.c.bf16 %v713_v8, %v712_v4  ;;  %v1048_v11 = vpack.c.bf16 %v729_v9, %v728_v5  ;;  %v498_v12 = vpop.f32.mrb[4].mxu0  ;;  %v538_v13 = vpop.f32.mrb[4].mxu1 }
 0x158   : > { %v682_v14 = vadd.f32 %v1550_v46, %v498_v12  ;;  %v698_v15 = vadd.f32 %v1550_v46, %v538_v13  ;;  %v500_v16 = vpop.f32.mrb[5].mxu0  ;;  %v540_v17 = vpop.f32.mrb[5].mxu1 }
 0x159   : > { %839 = vst [vmem:[%s1564_s24 + $0x8] sm:$0xff] %v1040_v10  ;;  %847 = vst [vmem:[%s1564_s24 + $0x48] sm:$0xff] %v1048_v11  ;;  %v683_v18 = vadd.f32 %v1552_v47, %v500_v16  ;;  %v699_v19 = vadd.f32 %v1552_v47, %v540_v17  ;;  %v502_v20 = vpop.f32.mrb[6].mxu0  ;;  %v542_v21 = vpop.f32.mrb[6].mxu1 }
 0x15a   : > { %v714_v22 = vmax.f32 %v682_v14, 0.0  ;;  %v730_v23 = vmax.f32 %v698_v15, 0.0  ;;  %v684_v24 = vadd.f32 %v1550_v46, %v502_v20  ;;  %v700_v25 = vadd.f32 %v1550_v46, %v542_v21  ;;  %v504_v26 = vpop.f32.mrb[7].mxu0  ;;  %v544_v27 = vpop.f32.mrb[7].mxu1 }
 0x15b   : > { %v715_v28 = vmax.f32 %v683_v18, 0.0  ;;  %v731_v29 = vmax.f32 %v699_v19, 0.0  ;;  %v685_v30 = vadd.f32 %v1552_v47, %v504_v26  ;;  %v701_v31 = vadd.f32 %v1552_v47, %v544_v27 }
 0x15c   : > { %v716_v32 = vmax.f32 %v684_v24, 0.0  ;;  %v732_v33 = vmax.f32 %v700_v25, 0.0 }
 0x15d   : > { %v1041_v34 = vpack.c.bf16 %v715_v28, %v714_v22  ;;  %v1049_v35 = vpack.c.bf16 %v731_v29, %v730_v23  ;;  %v717_v36 = vmax.f32 %v685_v30, 0.0  ;;  %v733_v37 = vmax.f32 %v701_v31, 0.0 }
 0x15f   : > { %840 = vst [vmem:[%s1564_s24 + $0x10] sm:$0xff] %v1041_v34  ;;  %848 = vst [vmem:[%s1564_s24 + $0x50] sm:$0xff] %v1049_v35  ;;  %v1042_v38 = vpack.c.bf16 %v717_v36, %v716_v32  ;;  %v1050_v39 = vpack.c.bf16 %v733_v37, %v732_v33  ;;  %v508_v40 = vpop.f32.mrb[8].mxu0  ;;  %v548_v41 = vpop.f32.mrb[8].mxu1 }
 0x160   : > { %v686_v42 = vadd.f32 %v1550_v46, %v508_v40  ;;  %v702_v43 = vadd.f32 %v1550_v46, %v548_v41  ;;  %v510_v44 = vpop.f32.mrb[9].mxu0  ;;  %v550_v45 = vpop.f32.mrb[9].mxu1 }
 0x161   : > { %841 = vst [vmem:[%s1564_s24 + $0x18] sm:$0xff] %v1042_v38  ;;  %849 = vst [vmem:[%s1564_s24 + $0x58] sm:$0xff] %v1050_v39  ;;  %v687_v48 = vadd.f32 %v1552_v47, %v510_v44  ;;  %v703_v49 = vadd.f32 %v1552_v47, %v550_v45  ;;  %v512_v50 = vpop.f32.mrb[10].mxu0  ;;  %v552_v51 = vpop.f32.mrb[10].mxu1 }
 0x162   : > { %v718_v52 = vmax.f32 %v686_v42, 0.0  ;;  %v734_v53 = vmax.f32 %v702_v43, 0.0  ;;  %v688_v54 = vadd.f32 %v1550_v46, %v512_v50  ;;  %v704_v55 = vadd.f32 %v1550_v46, %v552_v51  ;;  %v514_v56 = vpop.f32.mrb[11].mxu0  ;;  %v554_v57 = vpop.f32.mrb[11].mxu1 }
 0x163   : > { %v719_v58 = vmax.f32 %v687_v48, 0.0  ;;  %v735_v59 = vmax.f32 %v703_v49, 0.0  ;;  %v689_v60 = vadd.f32 %v1552_v47, %v514_v56  ;;  %v705_v61 = vadd.f32 %v1552_v47, %v554_v57 }
 0x164   : > { %v720_v62 = vmax.f32 %v688_v54, 0.0  ;;  %v736_v63 = vmax.f32 %v704_v55, 0.0 }
 0x165   : > { %v1043_v0 = vpack.c.bf16 %v719_v58, %v718_v52  ;;  %v1051_v1 = vpack.c.bf16 %v735_v59, %v734_v53  ;;  %v721_v2 = vmax.f32 %v689_v60, 0.0  ;;  %v737_v3 = vmax.f32 %v705_v61, 0.0 }
 0x167   : > { %842 = vst [vmem:[%s1564_s24 + $0x20] sm:$0xff] %v1043_v0  ;;  %850 = vst [vmem:[%s1564_s24 + $0x60] sm:$0xff] %v1051_v1  ;;  %v1044_v4 = vpack.c.bf16 %v721_v2, %v720_v62  ;;  %v1052_v5 = vpack.c.bf16 %v737_v3, %v736_v63  ;;  %v518_v6 = vpop.f32.mrb[12].mxu0  ;;  %v558_v7 = vpop.f32.mrb[12].mxu1 }
 0x168   : > { %v690_v8 = vadd.f32 %v1550_v46, %v518_v6  ;;  %v706_v9 = vadd.f32 %v1550_v46, %v558_v7  ;;  %v520_v10 = vpop.f32.mrb[13].mxu0  ;;  %v560_v11 = vpop.f32.mrb[13].mxu1 }
 0x169   : > { %843 = vst [vmem:[%s1564_s24 + $0x28] sm:$0xff] %v1044_v4  ;;  %851 = vst [vmem:[%s1564_s24 + $0x68] sm:$0xff] %v1052_v5  ;;  %v691_v12 = vadd.f32 %v1552_v47, %v520_v10  ;;  %v707_v13 = vadd.f32 %v1552_v47, %v560_v11  ;;  %v522_v14 = vpop.f32.mrb[14].mxu0  ;;  %v562_v15 = vpop.f32.mrb[14].mxu1 }
 0x16a   : > { %v722_v16 = vmax.f32 %v690_v8, 0.0  ;;  %v738_v17 = vmax.f32 %v706_v9, 0.0  ;;  %v692_v18 = vadd.f32 %v1550_v46, %v522_v14  ;;  %v708_v19 = vadd.f32 %v1550_v46, %v562_v15  ;;  %v524_v20 = vpop.f32.mrb[15].mxu0  ;;  %v564_v21 = vpop.f32.mrb[15].mxu1 }
 0x16b   : > { %v723_v22 = vmax.f32 %v691_v12, 0.0  ;;  %v739_v23 = vmax.f32 %v707_v13, 0.0  ;;  %v693_v24 = vadd.f32 %v1552_v47, %v524_v20  ;;  %v709_v25 = vadd.f32 %v1552_v47, %v564_v21 }
 0x16c   : > { %v724_v26 = vmax.f32 %v692_v18, 0.0  ;;  %v740_v27 = vmax.f32 %v708_v19, 0.0 }
 0x16d   : > { %v1045_v28 = vpack.c.bf16 %v723_v22, %v722_v16  ;;  %v1053_v46 = vpack.c.bf16 %v739_v23, %v738_v17  ;;  %v725_v29 = vmax.f32 %v693_v24, 0.0  ;;  %v741_v30 = vmax.f32 %v709_v25, 0.0 }
 0x16f   : > { %844 = vst [vmem:[%s1564_s24 + $0x30] sm:$0xff] %v1045_v28  ;;  %852 = vst [vmem:[%s1564_s24 + $0x70] sm:$0xff] %v1053_v46  ;;  %v1046_v47 = vpack.c.bf16 %v725_v29, %v724_v26  ;;  %v1054_v31 = vpack.c.bf16 %v741_v30, %v740_v27 }
 0x171   : > { %845 = vst [vmem:[%s1564_s24 + $0x38] sm:$0xff] %v1046_v47  ;;  %853 = vst [vmem:[%s1564_s24 + $0x78] sm:$0xff] %v1054_v31 }
 0x172   : > { %1246 = shalt.err (!%p1243_p5)
}
 0x173   : > { %s1247_s6 = scalar_lea.hbm %s1607_s25, 2048  ;;  %s1251_s19 = scalar_lea.hbm %s1665_s3, 4096 }
 0x174   : > { %p1248_p9 = scmp.ne.s32.totalorder %s1607_s25, %s1247_s6  ;;  %p1252_p3 = scmp.lt.u32.totalorder %s1607_s25, %s1665_s3 }
 0x175   : > { %p1253_p7 = scmp.lt.u32.totalorder %s1251_s19, %s1247_s6  ;;  %p1255_p4 = scmp.lt.u32.totalorder %s1247_s6, %s1607_s25 }
 0x176   : > { %p1249_p1 = pnand %p1248_p9, %p1448_p10 }
 0x177   : > { %p1254_p13 = por %p1253_p7, %p1252_p3 }
 0x178   : > { %p1250_p2 = pneg %p1249_p1 }
 0x179   : > { %p1256_p6 = por %p1255_p4, %p1254_p13 }
 0x17b   : > { %p1257_p8 = pnand %p1256_p6, %p1250_p2 }
 0x17d   : > { %1260 = shalt.err (!%p1257_p8)
}
 0x17e   : > { %s1327_s24 = smov 128   ;;  %s1328_s10 = smov 8  }
 0x17f   : > { %1079 = dma.vmem_to_hbm [thread:$0]  (%p1448_p10), %s1609_s11, 2048, %s1607_s25, %s855_s15, %s1327_s24, %s1327_s24, %s1328_s10  }
 0x180 PF: > { %s886_s9 = sand.u32 1, %s1299_s12   ;;  %p1683_p12 = scmp.ne.s32.totalorder %s1673_s23, 0 }
 0x181   : > { %p1684_p11 = scmp.ge.s32.totalorder %s1319_s17, 2  ;;  %s887_s18 = scalar_lea.sflag [#allocation5], %s886_s9 }
 0x183   : > { %p1090_p0 = pnand %p1684_p11, %p1683_p12 }
 0x185   : > { %1294 = dma.done.wait (!%p1090_p0), %s887_s18, 2048  }
 0x186   : > { %1296 = vsyncadd (!%p1090_p0), %s887_s18, 4294965248  ;;  %s20_s17 = sadd.s32 1, %s1319_s17   ;;  %s1685_s12 = smov %s1303_s13 }
 0x187   : > { %p17_p5 = scmp.ge.s32.totalorder %s20_s17, 4   ;;  %s1686_s13 = smov %s1307_s14 }
 0x188   : > { %s1687_s14 = smov %s1457_s5  ;;  %s1688_s15 = smov %s1315_s16 }
 0x189   : > { %s1689_s16 = smov %s1691_s28  ;;  %19 = sbr.rel (!%p17_p5) target bundleno = 7 (0x7), region = 93 }
 0x190   :  { %892 = vsyncpa [#allocation4], 1 }
 0x191   :  { %894 = vsyncpa [#allocation4 + $0x1], 1 }
 0x192   :  { %895 = vsyncpa [#allocation7], 1 }
 0x193   :  { %896 = vsyncpa [#allocation5], 1 }
 0x194   :  { %898 = vsyncpa [#allocation5 + $0x1], 1 }

</bundles_post_ra>
